<compile_context>
chip_gen: v6e
topology: v6e:2x2x1
jax: 0.10.0
libtpu: 0.0.40
codegen_flags: <defaults>
</compile_context>

<pallas_src>
import functools

import jax
import jax.numpy as jnp
from jax import lax
from jax.experimental import pallas as pl
from jax.experimental.pallas import tpu as pltpu

_H = 256       # padded fused hidden width (widest layer: action 128 | value 128)
_OUT_W = 128   # lane-dense output slab width


def _round_up(x, m):
    return (x + m - 1) // m * m


def _fused_kernel(x_ref, w_ref, b_ref, out_ref, *, k_in, n_actions):
    """Fused 4-layer MLP for both heads on one (TB, k_in) batch tile.

    w_ref: (4, 256, 256) block-diagonal packed weights (zeros elsewhere)
    b_ref: (4, 1, 256)   packed biases
    out_ref: (TB, 128)   lanes [0:n_actions] = softmax probs, lane n_actions = value
    """
    f32 = jnp.float32
    x = x_ref[...].astype(f32)                                        # (TB, k_in)

    # layer 1: (TB, k_in) @ (k_in, 256) -> [action 0:64 | value 64:128], rest 0
    h = jnp.dot(x, w_ref[0, :k_in, :], preferred_element_type=f32) + b_ref[0]
    h = jnp.maximum(h, 0.0)
    # layer 2: blockdiag(aw2, vw2) -> [action 0:128 | value 128:256]
    h = jnp.dot(h, w_ref[1], preferred_element_type=f32) + b_ref[1]
    h = jnp.maximum(h, 0.0)
    # layer 3: blockdiag(aw3, vw3) -> [action 0:64 | value 64:128], rest 0
    h = jnp.dot(h, w_ref[2], preferred_element_type=f32) + b_ref[2]
    h = jnp.maximum(h, 0.0)
    # layer 4: blockdiag(aw4, vw4); only the first 128 output lanes are meaningful:
    #   lanes [0:n_actions] = action logits, lane n_actions = value, rest 0.
    z = (jnp.dot(h, w_ref[3, :, :_OUT_W], preferred_element_type=f32)
         + b_ref[3, :, :_OUT_W])                                      # (TB, 128)

    # Masked, numerically-stable softmax over the first n_actions lanes only.
    lane = lax.broadcasted_iota(jnp.int32, z.shape, 1)                # (TB, 128)
    amask = lane < n_actions
    m = jnp.max(jnp.where(amask, z, -jnp.inf), axis=1, keepdims=True)
    e = jnp.where(amask, jnp.exp(z - m), 0.0)
    denom = jnp.sum(e, axis=1, keepdims=True)
    probs = e * pl.reciprocal(denom, approx=False)                    # EUP, exact

    # Single lane-dense store: probs in [0:n_actions], raw value at lane n_actions.
    out_ref[...] = jnp.where(lane == n_actions, z, probs).astype(out_ref.dtype)


def pack_params(params, n_inputs, n_actions):
    """Pack 16 per-layer tensors into one weight slab + one bias slab.

    Weights are (in, out); biases are (1, out).  Block-diagonal layout
    (zeros everywhere else):
      slab[0][:n_inputs, 0:64]=aw1,   [:n_inputs, 64:128]=vw1
      slab[1][0:64, 0:128]=aw2,       [64:128, 128:256]=vw2
      slab[2][0:128, 0:64]=aw3,       [128:256, 64:128]=vw3
      slab[3][0:64, 0:n_actions]=aw4, [64:128, n_actions]=vw4
    """
    assert n_inputs <= _H, "n_inputs must be <= 256 for this packing"
    assert n_actions + 1 <= _OUT_W, "n_actions must be <= 127 for this packing"
    w = jnp.zeros((4, _H, _H), jnp.float32)
    b = jnp.zeros((4, 1, _H), jnp.float32)

    w = w.at[0, :n_inputs, 0:64].set(params["aw1"])
    w = w.at[0, :n_inputs, 64:128].set(params["vw1"])
    b = b.at[0, 0, 0:64].set(params["ab1"][0])
    b = b.at[0, 0, 64:128].set(params["vb1"][0])

    w = w.at[1, 0:64, 0:128].set(params["aw2"])
    w = w.at[1, 64:128, 128:256].set(params["vw2"])
    b = b.at[1, 0, 0:128].set(params["ab2"][0])
    b = b.at[1, 0, 128:256].set(params["vb2"][0])

    w = w.at[2, 0:128, 0:64].set(params["aw3"])
    w = w.at[2, 128:256, 64:128].set(params["vw3"])
    b = b.at[2, 0, 0:64].set(params["ab3"][0])
    b = b.at[2, 0, 64:128].set(params["vb3"][0])

    w = w.at[3, 0:64, 0:n_actions].set(params["aw4"])
    w = w.at[3, 64:128, n_actions:n_actions + 1].set(params["vw4"])
    b = b.at[3, 0, 0:n_actions].set(params["ab4"][0])
    b = b.at[3, 0, n_actions:n_actions + 1].set(params["vb4"][0])
    return w, b


def actor_critic_separate(x, w_slab, b_slab, *, n_actions, block_b=256):
    """x: (B, n_inputs) f32.  w_slab/b_slab from pack_params (pack once, reuse)."""
    B, n_inputs = x.shape
    k_in = _round_up(n_inputs, 8)
    tb = min(block_b, _round_up(B, 8))
    b_pad = _round_up(B, tb)
    if (b_pad, k_in) != (B, n_inputs):
        x = jnp.pad(x, ((0, b_pad - B), (0, k_in - n_inputs)))
    x = x.astype(jnp.float32)

    kernel = functools.partial(_fused_kernel, k_in=k_in, n_actions=n_actions)
    out = pl.pallas_call(
        kernel,
        out_shape=jax.ShapeDtypeStruct((b_pad, _OUT_W), jnp.float32),
        grid_spec=pltpu.PrefetchScalarGridSpec(
            num_scalar_prefetch=0,
            grid=(b_pad // tb,),
            in_specs=[
                pl.BlockSpec((tb, k_in), lambda i: (i, 0)),
                pl.BlockSpec((4, _H, _H), lambda i: (0, 0, 0)),  # weights stay resident
                pl.BlockSpec((4, 1, _H), lambda i: (0, 0, 0)),   # biases stay resident
            ],
            out_specs=pl.BlockSpec((tb, _OUT_W), lambda i: (i, 0)),
        ),
        compiler_params=pltpu.CompilerParams(
            dimension_semantics=("parallel",)),  # batch tiles shard across TCs (v7x)
    )(x, w_slab, b_slab)

    action = out[:B, :n_actions]
    value = out[:B, n_actions:n_actions + 1]
    return action, value


def init_params(key, n_inputs, n_actions):
    """Mimics PyTorch default Linear init: U(-1/sqrt(fan_in), 1/sqrt(fan_in)).
    Weights stored as (in, out); biases as (1, out)."""
    dims_action = [(n_inputs, 64), (64, 128), (128, 64), (64, n_actions)]
    dims_value = [(n_inputs, 64), (64, 128), (128, 64), (64, 1)]
    params = {}
    keys = jax.random.split(key, 16)
    ki = 0
    for prefix, dims in (("a", dims_action), ("v", dims_value)):
        for i, (fan_in, fan_out) in enumerate(dims, start=1):
            bound = 1.0 / jnp.sqrt(jnp.float32(fan_in))
            params[f"{prefix}w{i}"] = jax.random.uniform(
                keys[ki], (fan_in, fan_out), jnp.float32, minval=-bound, maxval=bound)
            ki += 1
            params[f"{prefix}b{i}"] = jax.random.uniform(
                keys[ki], (1, fan_out), jnp.float32, minval=-bound, maxval=bound)
            ki += 1
    return params


def _reference(x, p):
    def lin(h, w, b):
        return h @ w + b
    a = jax.nn.relu(lin(x, p["aw1"], p["ab1"]))
    a = jax.nn.relu(lin(a, p["aw2"], p["ab2"]))
    a = jax.nn.relu(lin(a, p["aw3"], p["ab3"]))
    a = jax.nn.softmax(lin(a, p["aw4"], p["ab4"]), axis=1)
    v = jax.nn.relu(lin(x, p["vw1"], p["vb1"]))
    v = jax.nn.relu(lin(v, p["vw2"], p["vb2"]))
    v = jax.nn.relu(lin(v, p["vw3"], p["vb3"]))
    v = lin(v, p["vw4"], p["vb4"])
    return a, v


if __name__ == "__main__":
    B, n_inputs, n_actions = 8, 32, 8

    key = jax.random.PRNGKey(0)
    kx, kp = jax.random.split(key)
    x = jax.random.normal(kx, (B, n_inputs), jnp.float32)
    params = init_params(kp, n_inputs, n_actions)

    # Pack parameters once (amortized across calls with fixed weights).
    w_slab, b_slab = pack_params(params, n_inputs, n_actions)

    fwd = jax.jit(functools.partial(actor_critic_separate, n_actions=n_actions))
    action, value = fwd(x, w_slab, b_slab)
    action, value = jax.block_until_ready((action, value))

    # sanity-check against pure-JAX reference
    ref_a, ref_v = _reference(x, params)
    assert action.shape == (B, n_actions) and value.shape == (B, 1)
    assert jnp.allclose(action, ref_a, atol=1e-5, rtol=1e-5)
    assert jnp.allclose(value, ref_v, atol=1e-5, rtol=1e-5)
    assert jnp.allclose(jnp.sum(action, axis=1), 1.0, atol=1e-5)

    print("KERNEL_OK")
</pallas_src>

<mosaic_0001>
module attributes {stable_mosaic.version = 11 : i64} {
  func.func @_fused_kernel(%arg0: i32, %arg1: memref<8x32xf32, #tpu.memory_space<vmem>>, %arg2: memref<4x256x256xf32, #tpu.memory_space<vmem>>, %arg3: memref<4x1x256xf32, #tpu.memory_space<vmem>>, %arg4: memref<8x128xf32, #tpu.memory_space<vmem>>) attributes {dimension_semantics = [#tpu.dimension_semantics<parallel>], iteration_bounds = array<i64: 1>, scalar_prefetch = 0 : i64, scratch_operands = 0 : i64, tpu.core_type = #tpu.core_type<tc>, window_params = [{transform_indices = @transform_0, window_bounds = array<i64: 8, 32>}, {pipeline_mode = #tpu.pipeline_mode<synchronous>, transform_indices = @transform_1, window_bounds = array<i64: 4, 256, 256>}, {pipeline_mode = #tpu.pipeline_mode<synchronous>, transform_indices = @transform_2, window_bounds = array<i64: 4, 1, 256>}, {transform_indices = @transform_3, window_bounds = array<i64: 8, 128>}]} {
    %c0 = arith.constant 0 : index
    %c0_0 = arith.constant 0 : index
    %0 = vector.load %arg1[%c0, %c0_0] : memref<8x32xf32, #tpu.memory_space<vmem>>, vector<8x32xf32>
    %c0_1 = arith.constant 0 : index
    %c0_2 = arith.constant 0 : index
    %c0_3 = arith.constant 0 : index
    %1 = vector.load %arg2[%c0_1, %c0_2, %c0_3] : memref<4x256x256xf32, #tpu.memory_space<vmem>>, vector<1x32x256xf32>
    %2 = vector.shape_cast %1 : vector<1x32x256xf32> to vector<32x256xf32>
    %cst = arith.constant dense<0.000000e+00> : vector<8x256xf32>
    %3 = tpu.matmul %0, %2, %cst {dimension_numbers = #tpu.dot_dimension_numbers<[1], [0], [0], [1], [0, 0, 1, 1], [], []>} : vector<8x32xf32>, vector<32x256xf32>, vector<8x256xf32> -> vector<8x256xf32>
    %c0_4 = arith.constant 0 : index
    %c0_5 = arith.constant 0 : index
    %c0_6 = arith.constant 0 : index
    %4 = vector.load %arg3[%c0_4, %c0_5, %c0_6] : memref<4x1x256xf32, #tpu.memory_space<vmem>>, vector<1x1x256xf32>
    %5 = vector.shape_cast %4 : vector<1x1x256xf32> to vector<1x256xf32>
    %6 = vector.broadcast %5 : vector<1x256xf32> to vector<8x256xf32>
    %7 = arith.addf %3, %6 : vector<8x256xf32>
    %cst_7 = arith.constant 0.000000e+00 : f32
    %8 = vector.broadcast %cst_7 : f32 to vector<8x256xf32>
    %9 = arith.maximumf %7, %8 : vector<8x256xf32>
    %c1 = arith.constant 1 : index
    %c0_8 = arith.constant 0 : index
    %c0_9 = arith.constant 0 : index
    %10 = vector.load %arg2[%c1, %c0_8, %c0_9] : memref<4x256x256xf32, #tpu.memory_space<vmem>>, vector<1x256x256xf32>
    %11 = vector.shape_cast %10 : vector<1x256x256xf32> to vector<256x256xf32>
    %cst_10 = arith.constant dense<0.000000e+00> : vector<8x256xf32>
    %12 = tpu.matmul %9, %11, %cst_10 {dimension_numbers = #tpu.dot_dimension_numbers<[1], [0], [0], [1], [0, 0, 1, 1], [], []>} : vector<8x256xf32>, vector<256x256xf32>, vector<8x256xf32> -> vector<8x256xf32>
    %c1_11 = arith.constant 1 : index
    %c0_12 = arith.constant 0 : index
    %c0_13 = arith.constant 0 : index
    %13 = vector.load %arg3[%c1_11, %c0_12, %c0_13] : memref<4x1x256xf32, #tpu.memory_space<vmem>>, vector<1x1x256xf32>
    %14 = vector.shape_cast %13 : vector<1x1x256xf32> to vector<1x256xf32>
    %15 = vector.broadcast %14 : vector<1x256xf32> to vector<8x256xf32>
    %16 = arith.addf %12, %15 : vector<8x256xf32>
    %cst_14 = arith.constant 0.000000e+00 : f32
    %17 = vector.broadcast %cst_14 : f32 to vector<8x256xf32>
    %18 = arith.maximumf %16, %17 : vector<8x256xf32>
    %c2 = arith.constant 2 : index
    %c0_15 = arith.constant 0 : index
    %c0_16 = arith.constant 0 : index
    %19 = vector.load %arg2[%c2, %c0_15, %c0_16] : memref<4x256x256xf32, #tpu.memory_space<vmem>>, vector<1x256x256xf32>
    %20 = vector.shape_cast %19 : vector<1x256x256xf32> to vector<256x256xf32>
    %cst_17 = arith.constant dense<0.000000e+00> : vector<8x256xf32>
    %21 = tpu.matmul %18, %20, %cst_17 {dimension_numbers = #tpu.dot_dimension_numbers<[1], [0], [0], [1], [0, 0, 1, 1], [], []>} : vector<8x256xf32>, vector<256x256xf32>, vector<8x256xf32> -> vector<8x256xf32>
    %c2_18 = arith.constant 2 : index
    %c0_19 = arith.constant 0 : index
    %c0_20 = arith.constant 0 : index
    %22 = vector.load %arg3[%c2_18, %c0_19, %c0_20] : memref<4x1x256xf32, #tpu.memory_space<vmem>>, vector<1x1x256xf32>
    %23 = vector.shape_cast %22 : vector<1x1x256xf32> to vector<1x256xf32>
    %24 = vector.broadcast %23 : vector<1x256xf32> to vector<8x256xf32>
    %25 = arith.addf %21, %24 : vector<8x256xf32>
    %cst_21 = arith.constant 0.000000e+00 : f32
    %26 = vector.broadcast %cst_21 : f32 to vector<8x256xf32>
    %27 = arith.maximumf %25, %26 : vector<8x256xf32>
    %c3 = arith.constant 3 : index
    %c0_22 = arith.constant 0 : index
    %c0_23 = arith.constant 0 : index
    %28 = vector.load %arg2[%c3, %c0_22, %c0_23] : memref<4x256x256xf32, #tpu.memory_space<vmem>>, vector<1x256x128xf32>
    %29 = vector.shape_cast %28 : vector<1x256x128xf32> to vector<256x128xf32>
    %cst_24 = arith.constant dense<0.000000e+00> : vector<8x128xf32>
    %30 = tpu.matmul %27, %29, %cst_24 {dimension_numbers = #tpu.dot_dimension_numbers<[1], [0], [0], [1], [0, 0, 1, 1], [], []>} : vector<8x256xf32>, vector<256x128xf32>, vector<8x128xf32> -> vector<8x128xf32>
    %c3_25 = arith.constant 3 : index
    %c0_26 = arith.constant 0 : index
    %c0_27 = arith.constant 0 : index
    %31 = vector.load %arg3[%c3_25, %c0_26, %c0_27] : memref<4x1x256xf32, #tpu.memory_space<vmem>>, vector<1x1x128xf32>
    %32 = vector.shape_cast %31 : vector<1x1x128xf32> to vector<1x128xf32>
    %33 = vector.broadcast %32 : vector<1x128xf32> to vector<8x128xf32>
    %34 = arith.addf %30, %33 : vector<8x128xf32>
    %35 = tpu.iota {dimensions = array<i32: 1>} : vector<8x128xi32>
    %c8_i32 = arith.constant 8 : i32
    %36 = vector.broadcast %c8_i32 : i32 to vector<8x128xi32>
    %37 = arith.cmpi slt, %35, %36 : vector<8x128xi32>
    %cst_28 = arith.constant 0xFF800000 : f32
    %38 = vector.broadcast %cst_28 : f32 to vector<8x128xf32>
    %39 = arith.select %37, %34, %38 : vector<8x128xi1>, vector<8x128xf32>
    %cst_29 = arith.constant dense<0xFF800000> : vector<8xf32>
    %40 = vector.multi_reduction <maximumf>, %39, %cst_29 [1] : vector<8x128xf32> to vector<8xf32>
    %41 = vector.shape_cast %40 : vector<8xf32> to vector<8x1xf32>
    %42 = vector.broadcast %41 : vector<8x1xf32> to vector<8x128xf32>
    %43 = arith.subf %34, %42 : vector<8x128xf32>
    %44 = math.exp %43 : vector<8x128xf32>
    %cst_30 = arith.constant 0.000000e+00 : f32
    %45 = vector.broadcast %cst_30 : f32 to vector<8x128xf32>
    %46 = arith.select %37, %44, %45 : vector<8x128xi1>, vector<8x128xf32>
    %cst_31 = arith.constant dense<0.000000e+00> : vector<8xf32>
    %47 = vector.multi_reduction <add>, %46, %cst_31 [1] : vector<8x128xf32> to vector<8xf32>
    %48 = vector.shape_cast %47 : vector<8xf32> to vector<8x1xf32>
    %49 = tpu.reciprocal %48 : vector<8x1xf32> -> vector<8x1xf32>
    %50 = vector.broadcast %49 : vector<8x1xf32> to vector<8x128xf32>
    %51 = arith.mulf %46, %50 : vector<8x128xf32>
    %c8_i32_32 = arith.constant 8 : i32
    %52 = vector.broadcast %c8_i32_32 : i32 to vector<8x128xi32>
    %53 = arith.cmpi eq, %35, %52 : vector<8x128xi32>
    %54 = arith.select %53, %34, %51 : vector<8x128xi1>, vector<8x128xf32>
    %c0_33 = arith.constant 0 : index
    %c0_34 = arith.constant 0 : index
    %55 = vector.load %arg4[%c0_33, %c0_34] : memref<8x128xf32, #tpu.memory_space<vmem>>, vector<8x128xf32>
    tpu.vector_store %arg4[%c0_33, %c0_34], %54 {strides = array<i32>} : memref<8x128xf32, #tpu.memory_space<vmem>>, vector<8x128xf32>,
    return
  }
  func.func @transform_0(%arg0: i32) -> (i32, i32) {
    %c0_i32 = arith.constant 0 : i32
    %c0_i32_0 = arith.constant 0 : i32
    return %arg0, %c0_i32 : i32, i32
  }
  func.func @transform_1(%arg0: i32) -> (i32, i32, i32) {
    %c0_i32 = arith.constant 0 : i32
    %c0_i32_0 = arith.constant 0 : i32
    %c0_i32_1 = arith.constant 0 : i32
    %c0_i32_2 = arith.constant 0 : i32
    return %c0_i32, %c0_i32_0, %c0_i32_1 : i32, i32, i32
  }
  func.func @transform_2(%arg0: i32) -> (i32, i32, i32) {
    %c0_i32 = arith.constant 0 : i32
    %c0_i32_0 = arith.constant 0 : i32
    %c0_i32_1 = arith.constant 0 : i32
    %c0_i32_2 = arith.constant 0 : i32
    return %c0_i32, %c0_i32_0, %c0_i32_1 : i32, i32, i32
  }
  func.func @transform_3(%arg0: i32) -> (i32, i32) {
    %c0_i32 = arith.constant 0 : i32
    %c0_i32_0 = arith.constant 0 : i32
    return %arg0, %c0_i32 : i32, i32
  }
}

</mosaic_0001>

<bundles_post_ra>
// kernel: actor_critic_separate.1
= control target key start
LH: loop header
LB: loop body
LE: loop exit
PB: predicated region body
PF: predicated region fallthrough
CT: control target
= control target key end

     0   :  { %8 = vsyncpa [#allocation3], 0  ;;  %s752_s0 = inlined_call_operand.hbm [shape: f32[8,32], index: 0, kind: input, shape index: {}]   ;;  %s753_s1 = inlined_call_operand.hbm [shape: f32[4,256,256], index: 1, kind: input, shape index: {}]   ;;  %s754_s2 = inlined_call_operand.hbm [shape: f32[4,1,256], index: 2, kind: input, shape index: {}]   ;;  %s755_s3 = inlined_call_operand.vmem [shape: f32[8,128], index: 3, kind: output, shape index: {}]  }
   0x1   :  { %9 = vsyncpa [#allocation5], 0  ;;  %s700_s12 = smov [#allocation4]  }
   0x2   :  { %s25_s13 = sshll.u32 %s700_s12, 4  ;;  %s26_s13 = int_to_ptr.vmem [resolvable:$true] %s25_s13 }
   0x3   :  { %s644_s14 = scalar_lea.vmem %s26_s13, 32768  ;;  %p649_p1 = scmp.lt.s32.totalorder %s26_s13, %s26_s13 }
   0x4   :  { %p645_p0 = scmp.ne.s32.totalorder %s26_s13, %s644_s14  ;;  %p650_p2 = scmp.lt.s32.totalorder %s644_s14, %s644_s14 }
   0x6   :  { %p651_p3 = por %p650_p2, %p649_p1 }
   0x8   :  { %p652_p4 = pnand %p651_p3, %p645_p0 }
   0xa   :  { %655 = shalt.err (!%p652_p4)
}
   0xb   :  { %s701_s15 = smov 256   ;;  %s702_s16 = smov 16  }
   0xc   :  { %31 = dma.hbm_to_vmem [thread:$0]  %s753_s1, 32768, %s26_s13, [#allocation5], %s701_s15, %s701_s15, %s702_s16  }
   0xd   :  { %s703_s19 = smov [#allocation2]   ;;  %s704_s21 = smov [#allocation6]  }
   0xe   :  { %s16_s20 = sshll.u32 %s703_s19, 4  ;;  %s37_s22 = sshll.u32 %s704_s21, 4  ;;  %s17_s20 = int_to_ptr.vmem [resolvable:$true] %s16_s20  ;;  %s38_s22 = int_to_ptr.vmem [resolvable:$true] %s37_s22 }
   0xf   :  { %s664_s23 = scalar_lea.vmem %s17_s20, 128  ;;  %p669_p6 = scmp.lt.s32.totalorder %s17_s20, %s17_s20 }
  0x10   :  { %p665_p5 = scmp.ne.s32.totalorder %s17_s20, %s664_s23  ;;  %p670_p7 = scmp.lt.s32.totalorder %s664_s23, %s664_s23 }
  0x12   :  { %p671_p8 = por %p670_p7, %p669_p6 }
  0x14   :  { %p672_p9 = pnand %p671_p8, %p665_p5 }
  0x16   :  { %675 = shalt.err (!%p672_p9)
}
  0x17   :  { %19 = dma.hbm_to_vmem [thread:$0]  %s752_s0, 128, %s17_s20, [#allocation3]  }
  0x18   :  { %s684_s26 = scalar_lea.vmem %s38_s22, 128  ;;  %p689_p11 = scmp.lt.s32.totalorder %s38_s22, %s38_s22 }
  0x19   :  { %p685_p10 = scmp.ne.s32.totalorder %s38_s22, %s684_s26  ;;  %p690_p12 = scmp.lt.s32.totalorder %s684_s26, %s684_s26 }
  0x1b   :  { %p691_p13 = por %p690_p12, %p689_p11 }
  0x1d   :  { %p692_p0 = pnand %p691_p13, %p685_p10 }
  0x1f   :  { %695 = shalt.err (!%p692_p0)
}
  0x20   :  { %s705_s1 = smov 32   ;;  %s706_s27 = smov 2  }
  0x21   :  { %43 = dma.hbm_to_vmem [thread:$0]  %s754_s2, 128, %s38_s22, [#allocation5], %s705_s1, %s705_s1, %s706_s27  }
  0x22   :  { %696 = dma.done.wait [#allocation3], 128  }
  0x23   :  { %697 = vsyncadd [#allocation3], 4294967168 }
  0x24   :  { %698 = dma.done.wait [#allocation5], 32896  }
  0x25   :  { %699 = vsyncadd [#allocation5], 4294934400  ;;  %v707_v0 = vmov 0.0   ;;  %v61_v1 = vld [vmem:[#allocation4 + $0x38] sm:$0xff]  ;;  %v60_v2 = vld [vmem:[#allocation4 + $0x30] sm:$0xff]  ;;  %vm74_vm0 = vcmask 261120  }
  0x26   :  { %142 = vmatprep.mubr.f32.mxu0 %v707_v0  ;;  %v59_v3 = vld [vmem:[#allocation4 + $0x28] sm:$0xff]  ;;  %102 = vmatprep.subr.mxu0 %v61_v1  ;;  %v58_v4 = vld [vmem:[#allocation4 + $0x20] sm:$0xff]  ;;  %v57_v5 = vld [vmem:[#allocation4 + $0x18] sm:$0xff] }
  0x27   :  { %103 = vmatpush1.msra.mxu0 %v60_v2  ;;  %v56_v6 = vld [vmem:[#allocation4 + $0x10] sm:$0xff]  ;;  %v183_v7 = vld [vmem:[#allocation4 + $0x2f8] sm:$0xff]  ;;  %v181_v9 = vld [vmem:[#allocation4 + $0x2e8] sm:$0xff] }
  0x28   :  { %104 = vmatprep.subr.mxu0 %v59_v3  ;;  %v182_v8 = vld [vmem:[#allocation4 + $0x2f0] sm:$0xff]  ;;  %v55_v10 = vld [vmem:[#allocation4 + $0x8] sm:$0xff]  ;;  %229 = vmatprep.subr.mxu1 %v183_v7  ;;  %v180_v11 = vld [vmem:[#allocation4 + $0x2e0] sm:$0xff] }
  0x29   :  { %105 = vmatpush1.msra.mxu0 %v58_v4  ;;  %v54_v12 = vld [vmem:[#allocation4] sm:$0xff]  ;;  %230 = vmatpush1.msra.mxu1 %v182_v8  ;;  %v179_v13 = vld [vmem:[#allocation4 + $0x2d8] sm:$0xff]  ;;  %v178_v15 = vld [vmem:[#allocation4 + $0x2d0] sm:$0xff] }
  0x2a   :  { %106 = vmatprep.subr.mxu0 %v57_v5  ;;  %v53_v14 = vld [vmem:[#allocation2] sm:$0xff]  ;;  %231 = vmatprep.subr.mxu1 %v181_v9  ;;  %v177_v16 = vld [vmem:[#allocation4 + $0x2c8] sm:$0xff]  ;;  %v176_v17 = vld [vmem:[#allocation4 + $0x2c0] sm:$0xff] }
  0x2b   :  { %107 = vmatpush1.msra.mxu0 %v56_v6  ;;  %232 = vmatpush1.msra.mxu1 %v180_v11  ;;  %v175_v18 = vld [vmem:[#allocation4 + $0x2b8] sm:$0xff]  ;;  %v174_v19 = vld [vmem:[#allocation4 + $0x2b0] sm:$0xff]  ;;  %v173_v20 = vld [vmem:[#allocation4 + $0x2a8] sm:$0xff] }
  0x2c   :  { %108 = vmatprep.subr.mxu0 %v55_v10  ;;  %233 = vmatprep.subr.mxu1 %v179_v13  ;;  %v172_v21 = vld [vmem:[#allocation4 + $0x2a0] sm:$0xff]  ;;  %v171_v22 = vld [vmem:[#allocation4 + $0x298] sm:$0xff]  ;;  %v170_v23 = vld [vmem:[#allocation4 + $0x290] sm:$0xff] }
  0x2d   :  { %109 = vmatpush1.msra.mxu0 %v54_v12  ;;  %234 = vmatpush1.msra.mxu1 %v178_v15  ;;  %v169_v24 = vld [vmem:[#allocation4 + $0x288] sm:$0xff]  ;;  %v168_v25 = vld [vmem:[#allocation4 + $0x280] sm:$0xff]  ;;  %v167_v26 = vld [vmem:[#allocation4 + $0x278] sm:$0xff] }
  0x2e   :  { %587 = vmatmul.mubr.msk.f32.vlgmr.msra.gmra.mxu0 %vm74_vm0, %v53_v14  ;;  %235 = vmatprep.subr.mxu1 %v177_v16  ;;  %v166_v27 = vld [vmem:[#allocation4 + $0x270] sm:$0xff]  ;;  %v165_v28 = vld [vmem:[#allocation4 + $0x268] sm:$0xff]  ;;  %v164_v29 = vld [vmem:[#allocation4 + $0x260] sm:$0xff] }
  0x2f   :  { %236 = vmatpush1.msra.mxu1 %v176_v17  ;;  %v163_v30 = vld [vmem:[#allocation4 + $0x258] sm:$0xff]  ;;  %v162_v31 = vld [vmem:[#allocation4 + $0x250] sm:$0xff]  ;;  %v161_v32 = vld [vmem:[#allocation4 + $0x248] sm:$0xff] }
  0x30   :  { %237 = vmatprep.subr.mxu1 %v175_v18  ;;  %v160_v33 = vld [vmem:[#allocation4 + $0x240] sm:$0xff]  ;;  %v159_v34 = vld [vmem:[#allocation4 + $0x238] sm:$0xff]  ;;  %v158_v35 = vld [vmem:[#allocation4 + $0x230] sm:$0xff] }
  0x31   :  { %238 = vmatpush1.msra.mxu1 %v174_v19  ;;  %v157_v36 = vld [vmem:[#allocation4 + $0x228] sm:$0xff]  ;;  %v156_v37 = vld [vmem:[#allocation4 + $0x220] sm:$0xff]  ;;  %v155_v38 = vld [vmem:[#allocation4 + $0x218] sm:$0xff] }
  0x32   :  { %239 = vmatprep.subr.mxu1 %v173_v20  ;;  %v154_v39 = vld [vmem:[#allocation4 + $0x210] sm:$0xff]  ;;  %v153_v40 = vld [vmem:[#allocation4 + $0x208] sm:$0xff]  ;;  %v152_v41 = vld [vmem:[#allocation4 + $0x200] sm:$0xff] }
  0x33   :  { %240 = vmatpush1.msra.mxu1 %v172_v21  ;;  %v215_v42 = vld [vmem:[#allocation4 + $0x3f8] sm:$0xff]  ;;  %v214_v43 = vld [vmem:[#allocation4 + $0x3f0] sm:$0xff]  ;;  %v213_v44 = vld [vmem:[#allocation4 + $0x3e8] sm:$0xff] }
  0x34   :  { %241 = vmatprep.subr.mxu1 %v171_v22  ;;  %v212_v45 = vld [vmem:[#allocation4 + $0x3e0] sm:$0xff]  ;;  %v211_v46 = vld [vmem:[#allocation4 + $0x3d8] sm:$0xff]  ;;  %v210_v47 = vld [vmem:[#allocation4 + $0x3d0] sm:$0xff] }
  0x35   :  { %242 = vmatpush1.msra.mxu1 %v170_v23  ;;  %v209_v48 = vld [vmem:[#allocation4 + $0x3c8] sm:$0xff]  ;;  %v208_v49 = vld [vmem:[#allocation4 + $0x3c0] sm:$0xff]  ;;  %v207_v50 = vld [vmem:[#allocation4 + $0x3b8] sm:$0xff] }
  0x36   :  { %243 = vmatprep.subr.mxu1 %v169_v24  ;;  %v206_v51 = vld [vmem:[#allocation4 + $0x3b0] sm:$0xff]  ;;  %v205_v52 = vld [vmem:[#allocation4 + $0x3a8] sm:$0xff]  ;;  %v204_v53 = vld [vmem:[#allocation4 + $0x3a0] sm:$0xff] }
  0x37   :  { %244 = vmatpush1.msra.mxu1 %v168_v25  ;;  %v203_v54 = vld [vmem:[#allocation4 + $0x398] sm:$0xff]  ;;  %v202_v55 = vld [vmem:[#allocation4 + $0x390] sm:$0xff]  ;;  %v201_v56 = vld [vmem:[#allocation4 + $0x388] sm:$0xff] }
  0x38   :  { %245 = vmatprep.subr.mxu1 %v167_v26  ;;  %v200_v57 = vld [vmem:[#allocation4 + $0x380] sm:$0xff]  ;;  %v199_v58 = vld [vmem:[#allocation4 + $0x378] sm:$0xff]  ;;  %v198_v59 = vld [vmem:[#allocation4 + $0x370] sm:$0xff] }
  0x39   :  { %246 = vmatpush1.msra.mxu1 %v166_v27  ;;  %v197_v60 = vld [vmem:[#allocation4 + $0x368] sm:$0xff]  ;;  %v196_v61 = vld [vmem:[#allocation4 + $0x360] sm:$0xff]  ;;  %v195_v62 = vld [vmem:[#allocation4 + $0x358] sm:$0xff] }
  0x3a   :  { %247 = vmatprep.subr.mxu1 %v165_v28  ;;  %v194_v63 = vld [vmem:[#allocation4 + $0x350] sm:$0xff]  ;;  %v193_v0 = vld [vmem:[#allocation4 + $0x348] sm:$0xff]  ;;  %v192_v1 = vld [vmem:[#allocation4 + $0x340] sm:$0xff] }
  0x3b   :  { %248 = vmatpush1.msra.mxu1 %v164_v29  ;;  %v191_v2 = vld [vmem:[#allocation4 + $0x338] sm:$0xff]  ;;  %v190_v3 = vld [vmem:[#allocation4 + $0x330] sm:$0xff]  ;;  %v189_v4 = vld [vmem:[#allocation4 + $0x328] sm:$0xff] }
  0x3c   :  { %249 = vmatprep.subr.mxu1 %v163_v30  ;;  %v188_v5 = vld [vmem:[#allocation4 + $0x320] sm:$0xff]  ;;  %v187_v6 = vld [vmem:[#allocation4 + $0x318] sm:$0xff]  ;;  %v186_v7 = vld [vmem:[#allocation4 + $0x310] sm:$0xff] }
  0x3d   :  { %250 = vmatpush1.msra.mxu1 %v162_v31  ;;  %v185_v8 = vld [vmem:[#allocation4 + $0x308] sm:$0xff]  ;;  %v184_v9 = vld [vmem:[#allocation4 + $0x300] sm:$0xff]  ;;  %v334_v10 = vld [vmem:[#allocation4 + $0x4f8] sm:$0xff] }
  0x3e   :  { %251 = vmatprep.subr.mxu1 %v161_v32  ;;  %v333_v11 = vld [vmem:[#allocation4 + $0x4f0] sm:$0xff]  ;;  %v332_v12 = vld [vmem:[#allocation4 + $0x4e8] sm:$0xff]  ;;  %380 = vmatprep.subr.mxu0 %v334_v10  ;;  %v331_v13 = vld [vmem:[#allocation4 + $0x4e0] sm:$0xff] }
  0x3f   :  { %252 = vmatpush1.msra.mxu1 %v160_v33  ;;  %381 = vmatpush1.msra.mxu0 %v333_v11  ;;  %v330_v14 = vld [vmem:[#allocation4 + $0x4d8] sm:$0xff]  ;;  %v329_v15 = vld [vmem:[#allocation4 + $0x4d0] sm:$0xff]  ;;  %v328_v16 = vld [vmem:[#allocation4 + $0x4c8] sm:$0xff] }
  0x40   :  { %253 = vmatprep.subr.mxu1 %v159_v34  ;;  %382 = vmatprep.subr.mxu0 %v332_v12  ;;  %v327_v17 = vld [vmem:[#allocation4 + $0x4c0] sm:$0xff]  ;;  %v326_v18 = vld [vmem:[#allocation4 + $0x4b8] sm:$0xff]  ;;  %v325_v19 = vld [vmem:[#allocation4 + $0x4b0] sm:$0xff] }
  0x41   :  { %254 = vmatpush1.msra.mxu1 %v158_v35  ;;  %383 = vmatpush1.msra.mxu0 %v331_v13  ;;  %v324_v20 = vld [vmem:[#allocation4 + $0x4a8] sm:$0xff]  ;;  %v323_v21 = vld [vmem:[#allocation4 + $0x4a0] sm:$0xff]  ;;  %v322_v22 = vld [vmem:[#allocation4 + $0x498] sm:$0xff] }
  0x42   :  { %255 = vmatprep.subr.mxu1 %v157_v36  ;;  %384 = vmatprep.subr.mxu0 %v330_v14  ;;  %v321_v23 = vld [vmem:[#allocation4 + $0x490] sm:$0xff]  ;;  %v320_v24 = vld [vmem:[#allocation4 + $0x488] sm:$0xff]  ;;  %v319_v25 = vld [vmem:[#allocation4 + $0x480] sm:$0xff] }
  0x43   :  { %256 = vmatpush1.msra.mxu1 %v156_v37  ;;  %385 = vmatpush1.msra.mxu0 %v329_v15  ;;  %v318_v26 = vld [vmem:[#allocation4 + $0x478] sm:$0xff]  ;;  %v317_v27 = vld [vmem:[#allocation4 + $0x470] sm:$0xff]  ;;  %v316_v28 = vld [vmem:[#allocation4 + $0x468] sm:$0xff] }
  0x44   :  { %257 = vmatprep.subr.mxu1 %v155_v38  ;;  %386 = vmatprep.subr.mxu0 %v328_v16  ;;  %v315_v29 = vld [vmem:[#allocation4 + $0x460] sm:$0xff]  ;;  %v314_v30 = vld [vmem:[#allocation4 + $0x458] sm:$0xff]  ;;  %v313_v31 = vld [vmem:[#allocation4 + $0x450] sm:$0xff] }
  0x45   :  { %258 = vmatpush1.msra.mxu1 %v154_v39  ;;  %387 = vmatpush1.msra.mxu0 %v327_v17  ;;  %v312_v32 = vld [vmem:[#allocation4 + $0x448] sm:$0xff]  ;;  %v311_v33 = vld [vmem:[#allocation4 + $0x440] sm:$0xff]  ;;  %v310_v34 = vld [vmem:[#allocation4 + $0x438] sm:$0xff] }
  0x46   :  { %259 = vmatprep.subr.mxu1 %v153_v40  ;;  %388 = vmatprep.subr.mxu0 %v326_v18  ;;  %v309_v35 = vld [vmem:[#allocation4 + $0x430] sm:$0xff]  ;;  %v308_v36 = vld [vmem:[#allocation4 + $0x428] sm:$0xff]  ;;  %v307_v37 = vld [vmem:[#allocation4 + $0x420] sm:$0xff] }
  0x47   :  { %260 = vmatpush1.msra.mxu1 %v152_v41  ;;  %389 = vmatpush1.msra.mxu0 %v325_v19  ;;  %v306_v38 = vld [vmem:[#allocation4 + $0x418] sm:$0xff]  ;;  %v305_v39 = vld [vmem:[#allocation4 + $0x410] sm:$0xff]  ;;  %v304_v40 = vld [vmem:[#allocation4 + $0x408] sm:$0xff] }
  0x48   :  { %261 = vmatprep.subr.mxu1 %v215_v42  ;;  %390 = vmatprep.subr.mxu0 %v324_v20  ;;  %v303_v41 = vld [vmem:[#allocation4 + $0x400] sm:$0xff]  ;;  %v366_v42 = vld [vmem:[#allocation4 + $0x5f8] sm:$0xff]  ;;  %v341_v16 = vld [vmem:[#allocation4 + $0x530] sm:$0xff] }
  0x49   :  { %262 = vmatpush2.msra.mxu1 %v214_v43  ;;  %391 = vmatpush1.msra.mxu0 %v323_v21  ;;  %v365_v43 = vld [vmem:[#allocation4 + $0x5f0] sm:$0xff]  ;;  %v342_v15 = vld [vmem:[#allocation4 + $0x538] sm:$0xff]  ;;  %v340_v17 = vld [vmem:[#allocation4 + $0x528] sm:$0xff] }
  0x4a   :  { %263 = vmatprep.subr.mxu1 %v213_v44  ;;  %392 = vmatprep.subr.mxu0 %v322_v22  ;;  %v364_v44 = vld [vmem:[#allocation4 + $0x5e8] sm:$0xff]  ;;  %v339_v18 = vld [vmem:[#allocation4 + $0x520] sm:$0xff]  ;;  %v338_v19 = vld [vmem:[#allocation4 + $0x518] sm:$0xff] }
  0x4b   :  { %264 = vmatpush2.msra.mxu1 %v212_v45  ;;  %393 = vmatpush1.msra.mxu0 %v321_v23  ;;  %v363_v45 = vld [vmem:[#allocation4 + $0x5e0] sm:$0xff]  ;;  %v337_v20 = vld [vmem:[#allocation4 + $0x510] sm:$0xff]  ;;  %v336_v21 = vld [vmem:[#allocation4 + $0x508] sm:$0xff] }
  0x4c   :  { %265 = vmatprep.subr.mxu1 %v211_v46  ;;  %394 = vmatprep.subr.mxu0 %v320_v24  ;;  %v362_v46 = vld [vmem:[#allocation4 + $0x5d8] sm:$0xff]  ;;  %v335_v22 = vld [vmem:[#allocation4 + $0x500] sm:$0xff]  ;;  %v485_v23 = vld [vmem:[#allocation4 + $0x7f0] sm:$0xff] }
  0x4d   :  { %266 = vmatpush2.msra.mxu1 %v210_v47  ;;  %395 = vmatpush1.msra.mxu0 %v319_v25  ;;  %v361_v47 = vld [vmem:[#allocation4 + $0x5d0] sm:$0xff]  ;;  %v484_v25 = vld [vmem:[#allocation4 + $0x7e0] sm:$0xff] }
  0x4e   :  { %267 = vmatprep.subr.mxu1 %v209_v48  ;;  %396 = vmatprep.subr.mxu0 %v318_v26  ;;  %v360_v48 = vld [vmem:[#allocation4 + $0x5c8] sm:$0xff]  ;;  %v469_v24 = vld [vmem:[#allocation4 + $0x6f0] sm:$0xff]  ;;  %v468_v26 = vld [vmem:[#allocation4 + $0x6e0] sm:$0xff] }
  0x4f   :  { %268 = vmatpush2.msra.mxu1 %v208_v49  ;;  %397 = vmatpush1.msra.mxu0 %v317_v27  ;;  %v359_v49 = vld [vmem:[#allocation4 + $0x5c0] sm:$0xff]  ;;  %v483_v27 = vld [vmem:[#allocation4 + $0x7d0] sm:$0xff] }
  0x50   :  { %269 = vmatprep.subr.mxu1 %v207_v50  ;;  %398 = vmatprep.subr.mxu0 %v316_v28  ;;  %v358_v50 = vld [vmem:[#allocation4 + $0x5b8] sm:$0xff]  ;;  %v467_v28 = vld [vmem:[#allocation4 + $0x6d0] sm:$0xff] }
  0x51   :  { %270 = vmatpush2.msra.mxu1 %v206_v51  ;;  %399 = vmatpush1.msra.mxu0 %v315_v29  ;;  %v357_v51 = vld [vmem:[#allocation4 + $0x5b0] sm:$0xff]  ;;  %v482_v29 = vld [vmem:[#allocation4 + $0x7c0] sm:$0xff] }
  0x52   :  { %271 = vmatprep.subr.mxu1 %v205_v52  ;;  %400 = vmatprep.subr.mxu0 %v314_v30  ;;  %v356_v52 = vld [vmem:[#allocation4 + $0x5a8] sm:$0xff]  ;;  %v466_v30 = vld [vmem:[#allocation4 + $0x6c0] sm:$0xff] }
  0x53   :  { %272 = vmatpush2.msra.mxu1 %v204_v53  ;;  %401 = vmatpush1.msra.mxu0 %v313_v31  ;;  %v355_v53 = vld [vmem:[#allocation4 + $0x5a0] sm:$0xff]  ;;  %v481_v31 = vld [vmem:[#allocation4 + $0x7b0] sm:$0xff] }
  0x54   :  { %273 = vmatprep.subr.mxu1 %v203_v54  ;;  %402 = vmatprep.subr.mxu0 %v312_v32  ;;  %v354_v54 = vld [vmem:[#allocation4 + $0x598] sm:$0xff]  ;;  %v465_v32 = vld [vmem:[#allocation4 + $0x6b0] sm:$0xff] }
  0x55   :  { %274 = vmatpush2.msra.mxu1 %v202_v55  ;;  %403 = vmatpush1.msra.mxu0 %v311_v33  ;;  %v353_v55 = vld [vmem:[#allocation4 + $0x590] sm:$0xff]  ;;  %v480_v33 = vld [vmem:[#allocation4 + $0x7a0] sm:$0xff] }
  0x56   :  { %275 = vmatprep.subr.mxu1 %v201_v56  ;;  %404 = vmatprep.subr.mxu0 %v310_v34  ;;  %v352_v56 = vld [vmem:[#allocation4 + $0x588] sm:$0xff]  ;;  %v464_v34 = vld [vmem:[#allocation4 + $0x6a0] sm:$0xff] }
  0x57   :  { %276 = vmatpush2.msra.mxu1 %v200_v57  ;;  %405 = vmatpush1.msra.mxu0 %v309_v35  ;;  %v351_v57 = vld [vmem:[#allocation4 + $0x580] sm:$0xff]  ;;  %v479_v35 = vld [vmem:[#allocation4 + $0x790] sm:$0xff] }
  0x58   :  { %277 = vmatprep.subr.mxu1 %v199_v58  ;;  %406 = vmatprep.subr.mxu0 %v308_v36  ;;  %v350_v58 = vld [vmem:[#allocation4 + $0x578] sm:$0xff]  ;;  %v463_v36 = vld [vmem:[#allocation4 + $0x690] sm:$0xff] }
  0x59   :  { %278 = vmatpush2.msra.mxu1 %v198_v59  ;;  %407 = vmatpush1.msra.mxu0 %v307_v37  ;;  %v349_v59 = vld [vmem:[#allocation4 + $0x570] sm:$0xff]  ;;  %v478_v37 = vld [vmem:[#allocation4 + $0x780] sm:$0xff] }
  0x5a   :  { %279 = vmatprep.subr.mxu1 %v197_v60  ;;  %408 = vmatprep.subr.mxu0 %v306_v38  ;;  %v348_v60 = vld [vmem:[#allocation4 + $0x568] sm:$0xff]  ;;  %v462_v38 = vld [vmem:[#allocation4 + $0x680] sm:$0xff] }
  0x5b   :  { %280 = vmatpush2.msra.mxu1 %v196_v61  ;;  %409 = vmatpush1.msra.mxu0 %v305_v39  ;;  %v347_v61 = vld [vmem:[#allocation4 + $0x560] sm:$0xff]  ;;  %v477_v39 = vld [vmem:[#allocation4 + $0x770] sm:$0xff] }
  0x5c   :  { %281 = vmatprep.subr.mxu1 %v195_v62  ;;  %410 = vmatprep.subr.mxu0 %v304_v40  ;;  %v346_v62 = vld [vmem:[#allocation4 + $0x558] sm:$0xff]  ;;  %v461_v40 = vld [vmem:[#allocation4 + $0x670] sm:$0xff] }
  0x5d   :  { %282 = vmatpush2.msra.mxu1 %v194_v63  ;;  %411 = vmatpush1.msra.mxu0 %v303_v41  ;;  %v345_v63 = vld [vmem:[#allocation4 + $0x550] sm:$0xff]  ;;  %v476_v41 = vld [vmem:[#allocation4 + $0x760] sm:$0xff] }
  0x5e   :  { %283 = vmatprep.subr.mxu1 %v193_v0  ;;  %412 = vmatprep.subr.mxu0 %v366_v42  ;;  %v344_v0 = vld [vmem:[#allocation4 + $0x548] sm:$0xff]  ;;  %v460_v42 = vld [vmem:[#allocation4 + $0x660] sm:$0xff] }
  0x5f   :  { %284 = vmatpush2.msra.mxu1 %v192_v1  ;;  %413 = vmatpush2.msra.mxu0 %v365_v43  ;;  %v343_v1 = vld [vmem:[#allocation4 + $0x540] sm:$0xff]  ;;  %v475_v43 = vld [vmem:[#allocation4 + $0x750] sm:$0xff] }
  0x60   :  { %285 = vmatprep.subr.mxu1 %v191_v2  ;;  %414 = vmatprep.subr.mxu0 %v364_v44  ;;  %v64_v2 = vlaneseq  ;;  %v459_v44 = vld [vmem:[#allocation4 + $0x650] sm:$0xff] }
  0x61   :  { %286 = vmatpush2.msra.mxu1 %v190_v3  ;;  %415 = vmatpush2.msra.mxu0 %v363_v45  ;;  %v474_v45 = vld [vmem:[#allocation4 + $0x740] sm:$0xff] }
  0x62   :  { %287 = vmatprep.subr.mxu1 %v189_v4  ;;  %416 = vmatprep.subr.mxu0 %v362_v46  ;;  %v65_v3 = vshrl.u32 %v64_v2, 7  ;;  %v458_v46 = vld [vmem:[#allocation4 + $0x640] sm:$0xff] }
  0x63   :  { %288 = vmatpush2.msra.mxu1 %v188_v5  ;;  %417 = vmatpush2.msra.mxu0 %v361_v47  ;;  %v62_v5 = vld [vmem:[#allocation6] sm:$0x3]  ;;  %v217_v47 = vld [vmem:[#allocation6 + $0x2] sm:$0x3] }
  0x64   :  { %289 = vmatprep.subr.mxu1 %v187_v6  ;;  %418 = vmatprep.subr.mxu0 %v360_v48  ;;  %v738_v4 = vsub.s32 0, %v65_v3  ;;  %v740_v6 = vsub.s32 1, %v65_v3 }
  0x65   :  { %290 = vmatpush2.msra.mxu1 %v186_v7  ;;  %419 = vmatpush2.msra.mxu0 %v359_v49 }
  0x66   :  { %291 = vmatprep.subr.mxu1 %v185_v8  ;;  %420 = vmatprep.subr.mxu0 %v358_v50  ;;  %v67_v7 = vrot.slane %v62_v5, %v738_v4  ;;  %v71_v8 = vrot.slane %v62_v5, %v740_v6  ;;  %v222_v48 = vrot.slane %v217_v47, %v738_v4 }
  0x67   :  { %292 = vmatpush2.msra.mxu1 %v184_v9  ;;  %421 = vmatpush2.msra.mxu0 %v357_v51  ;;  %v226_v49 = vrot.slane %v217_v47, %v740_v6 }
  0x68   :  { %422 = vmatprep.subr.mxu0 %v356_v52  ;;  %589 = vmatprep.subr.mxu1 %v485_v23 }
  0x69   :  { %423 = vmatpush2.msra.mxu0 %v355_v53 }
  0x6a   :  { %424 = vmatprep.subr.mxu0 %v354_v54 }
  0x6b   :  { %425 = vmatpush2.msra.mxu0 %v353_v55 }
  0x6c   :  { %426 = vmatprep.subr.mxu0 %v352_v56  ;;  %v473_v56 = vld [vmem:[#allocation4 + $0x730] sm:$0xff] }
  0x6d   :  { %427 = vmatpush2.msra.mxu0 %v351_v57  ;;  %v457_v57 = vld [vmem:[#allocation4 + $0x630] sm:$0xff] }
  0x6e   :  { %428 = vmatprep.subr.mxu0 %v350_v58  ;;  %v472_v58 = vld [vmem:[#allocation4 + $0x720] sm:$0xff] }
  0x6f   :  { %429 = vmatpush2.msra.mxu0 %v349_v59  ;;  %v456_v59 = vld [vmem:[#allocation4 + $0x620] sm:$0xff] }
  0x70   :  { %430 = vmatprep.subr.mxu0 %v348_v60  ;;  %v471_v60 = vld [vmem:[#allocation4 + $0x710] sm:$0xff] }
  0x71   :  { %431 = vmatpush2.msra.mxu0 %v347_v61  ;;  %v455_v61 = vld [vmem:[#allocation4 + $0x610] sm:$0xff] }
  0x72   :  { %432 = vmatprep.subr.mxu0 %v346_v62  ;;  %v470_v62 = vld [vmem:[#allocation4 + $0x700] sm:$0xff] }
  0x73   :  { %433 = vmatpush2.msra.mxu0 %v345_v63  ;;  %v454_v63 = vld [vmem:[#allocation4 + $0x600] sm:$0xff] }
  0x74   :  { %434 = vmatprep.subr.mxu0 %v344_v0  ;;  %v368_v0 = vld [vmem:[#allocation6 + $0x4] sm:$0x3] }
  0x75   :  { %435 = vmatpush2.msra.mxu0 %v343_v1  ;;  %v373_v1 = vrot.slane %v368_v0, %v738_v4  ;;  %v377_v3 = vrot.slane %v368_v0, %v740_v6 }
  0x76   :  { %436 = vmatprep.subr.mxu0 %v342_v15 }
  0x77   :  { %437 = vmatpush2.msra.mxu0 %v341_v16 }
  0x78   :  { %438 = vmatprep.subr.mxu0 %v340_v17 }
  0x79   :  { %439 = vmatpush2.msra.mxu0 %v339_v18 }
  0x7a   :  { %440 = vmatprep.subr.mxu0 %v338_v19 }
  0x7b   :  { %441 = vmatpush2.msra.mxu0 %v337_v20 }
  0x7c   :  { %442 = vmatprep.subr.mxu0 %v336_v21 }
  0x7d   :  { %443 = vmatpush2.msra.mxu0 %v335_v22 }
  0xee   :  { %v144_v9 = vpop.f32.mrf.mxu0 }
  0xef   :  { %v145_v10 = vadd.f32 %v144_v9, %v67_v7 }
  0xf0   :  { %v146_v11 = vpop.f32.mrf.mxu0 }
  0xf1   :  { %v147_v12 = vadd.f32 %v146_v11, %v71_v8  ;;  %v149_v14 = vmax.f32 %v145_v10, 0.0 }
  0xf3   :  { %v150_v13 = vmax.f32 %v147_v12, 0.0 }
  0xf5   :  { %293 = vmatprep.mubr.f32.mxu1 %v150_v13  ;;  %v565_v13 = vand.u32 127, %v64_v2 }
  0xf6   :  { %294 = vmatmul.mubr.f32.vlgmr.msra.gmra.mxu1 %v149_v14  ;;  %v588_v14 = vld [vmem:[#allocation6 + $0x6] ss:$0 sm:$0xff] }
  0xf7   :  { %590 = vmatpush3.msra.mxu1 %v469_v24  ;;  %vm566_vm1 = vcmp.lt.s32.totalorder %v565_v13, 8  ;;  %vm578_vm2 = vcmp.eq.s32.totalorder %v565_v13, 8 }
  0xf8   :  { %591 = vmatprep.subr.mxu1 %v484_v25 }
  0xf9   :  { %592 = vmatpush3.msra.mxu1 %v468_v26 }
  0xfa   :  { %593 = vmatprep.subr.mxu1 %v483_v27 }
  0xfb   :  { %594 = vmatpush3.msra.mxu1 %v467_v28 }
  0xfc   :  { %595 = vmatprep.subr.mxu1 %v482_v29 }
  0xfd   :  { %596 = vmatpush3.msra.mxu1 %v466_v30 }
  0xfe   :  { %597 = vmatprep.subr.mxu1 %v481_v31 }
  0xff   :  { %598 = vmatpush3.msra.mxu1 %v465_v32 }
 0x100   :  { %599 = vmatprep.subr.mxu1 %v480_v33 }
 0x101   :  { %600 = vmatpush3.msra.mxu1 %v464_v34 }
 0x102   :  { %601 = vmatprep.subr.mxu1 %v479_v35 }
 0x103   :  { %602 = vmatpush3.msra.mxu1 %v463_v36 }
 0x104   :  { %603 = vmatprep.subr.mxu1 %v478_v37 }
 0x105   :  { %604 = vmatpush3.msra.mxu1 %v462_v38 }
 0x106   :  { %605 = vmatprep.subr.mxu1 %v477_v39 }
 0x107   :  { %606 = vmatpush3.msra.mxu1 %v461_v40 }
 0x108   :  { %607 = vmatprep.subr.mxu1 %v476_v41 }
 0x109   :  { %608 = vmatpush3.msra.mxu1 %v460_v42 }
 0x10a   :  { %609 = vmatprep.subr.mxu1 %v475_v43 }
 0x10b   :  { %610 = vmatpush3.msra.mxu1 %v459_v44 }
 0x10c   :  { %611 = vmatprep.subr.mxu1 %v474_v45 }
 0x10d   :  { %612 = vmatpush3.msra.mxu1 %v458_v46 }
 0x10e   :  { %613 = vmatprep.subr.mxu1 %v473_v56 }
 0x10f   :  { %614 = vmatpush3.msra.mxu1 %v457_v57 }
 0x110   :  { %615 = vmatprep.subr.mxu1 %v472_v58 }
 0x111   :  { %616 = vmatpush3.msra.mxu1 %v456_v59 }
 0x112   :  { %617 = vmatprep.subr.mxu1 %v471_v60 }
 0x113   :  { %618 = vmatpush3.msra.mxu1 %v455_v61 }
 0x114   :  { %619 = vmatprep.subr.mxu1 %v470_v62 }
 0x115   :  { %620 = vmatpush3.msra.mxu1 %v454_v63 }
 0x1b6   :  { %v295_v50 = vpop.f32.mrf.mxu1 }
 0x1b7   :  { %v296_v51 = vadd.f32 %v295_v50, %v222_v48 }
 0x1b8   :  { %v297_v52 = vpop.f32.mrf.mxu1 }
 0x1b9   :  { %v298_v53 = vadd.f32 %v297_v52, %v226_v49  ;;  %v300_v55 = vmax.f32 %v296_v51, 0.0 }
 0x1bb   :  { %v301_v54 = vmax.f32 %v298_v53, 0.0 }
 0x1bd   :  { %444 = vmatprep.mubr.f32.mxu0 %v301_v54 }
 0x1be   :  { %445 = vmatmul.mubr.f32.vlgmr.msra.gmra.mxu0 %v300_v55 }
 0x27e   :  { %v446_v5 = vpop.f32.mrf.mxu0 }
 0x27f   :  { %v447_v7 = vadd.f32 %v446_v5, %v373_v1 }
 0x280   :  { %v448_v8 = vpop.f32.mrf.mxu0 }
 0x281   :  { %v449_v9 = vadd.f32 %v448_v8, %v377_v3  ;;  %v451_v11 = vmax.f32 %v447_v7, 0.0 }
 0x283   :  { %v452_v10 = vmax.f32 %v449_v9, 0.0 }
 0x285   :  { %558 = vmatprep.mubr.f32.mxu1 %v452_v10 }
 0x286   :  { %559 = vmatmul.mubr.f32.vlgmr.msra.gmra.mxu1 %v451_v11 }
 0x346   :  { %v621_v12 = vpop.f32.mrf.mxu1 }
 0x348   :  { %v622_v15 = vpop.f32.mrf.mxu1 }
 0x349   :  { %v623_v16 = vadd.f32 %v622_v15, %v621_v12 }
 0x34b   :  { %v561_v17 = vadd.f32 %v623_v16, %v588_v14 }
 0x34d   :  { %v567_v18 = vsel %vm566_vm1, %v561_v17, -inf }
 0x34e   :  { %568 = vmax.xlane.f32.xlu0 %v567_v18 }
 0x3d7   :  { %v569_v4 = vpop.xlane.xlu0 %568 }
 0x3d8   :  { %v570_v6 = vsub.f32 %v561_v17, %v569_v4 }
 0x3da   :  { %v571_v19 = vmul.f32 1.442695, %v570_v6 }
 0x3dc   :  { %632 = vpow2.f32 %v571_v19 }
 0x3e9   :  { %v633_v20 = vpop.eup %632 }
 0x3ea   :  { %v573_v21 = vsel %vm566_vm1, %v633_v20, 0.0 }
 0x3eb   :  { %574 = vadd.xlane.f32.xlu0 %v573_v21 }
 0x474   :  { %v575_v22 = vpop.xlane.xlu0 %574 }
 0x475   :  { %634 = vrcp.f32 %v575_v22 }
 0x482   :  { %v635_v23 = vpop.eup %634 }
 0x483   :  { %v577_v24 = vmul.f32 %v635_v23, %v573_v21 }
 0x485   :  { %v579_v2 = vsel %vm578_vm2, %v561_v17, %v577_v24 }
 0x486   :  { %580 = vst [vmem:[%s755_s3] sm:$0xff] %v579_v2 }
 0x487   :  { %585 = vsyncpa [#allocation3], 1 }
 0x488   :  { %586 = vsyncpa [#allocation5], 1 }

</bundles_post_ra>
